<compile_context>
chip_gen: v5e
topology: v5e:2x2
jax: 0.10.0
libtpu: 0.0.40
codegen_flags: <defaults>
</compile_context>

<pallas_src>
import functools

import jax
import jax.numpy as jnp
from jax import lax
from jax.experimental import pallas as pl
from jax.experimental.pallas import tpu as pltpu
import numpy as np


def _resblock_kernel(x_ref, w1_ref, b1_ref, w2_ref, b2_ref, w3_ref, b3_ref,
                     masks_ref, o_ref, *, W, HW):
    # x_ref: (B*C, HW) — batch folded onto the sublane axis, spatial on lanes.
    x = x_ref[...].astype(jnp.float32)                         # (BC, HW)

    # ---- conv1: 1x1 C->Cmid (block-diag over batch) + bias + ReLU ----
    # One lane-dense MXU matmul: (BM, BC) @ (BC, HW).
    y1 = jnp.dot(w1_ref[...], x, preferred_element_type=jnp.float32)
    y1 = jnp.maximum(y1 + b1_ref[...], 0.0)                    # (BM, HW)

    # ---- conv2: 3x3 SAME, Cmid->Cmid — im2col on the MXU ----
    # Tap (dh, dw) reads input at flattened offset (dh-1)*W + (dw-1); realize
    # it as a lane roll of y1 (per sublane row = per image) plus a (1, HW)
    # boundary mask, then contract with the tap's block-diag (BM, BM) weight
    # on the MXU and accumulate.  Each tap tile dies right after its dot.
    acc = None
    for dh in range(3):
        for dw in range(3):
            t = dh * 3 + dw
            off = (dh - 1) * W + (dw - 1)
            if off == 0:
                tap = y1                                       # center tap, mask == 1
            else:
                m = masks_ref[pl.ds(t, 1), :]                  # (1, HW), sublane bcast
                tap = pltpu.roll(y1, shift=(-off) % HW, axis=1) * m
            d = jnp.dot(w2_ref[t], tap, preferred_element_type=jnp.float32)
            acc = d if acc is None else acc + d
    y2 = jnp.maximum(acc + b2_ref[...], 0.0)                   # (BM, HW)

    # ---- conv3: 1x1 Cmid->C (block-diag) + bias, residual add, ReLU ----
    y3 = jnp.dot(w3_ref[...], y2, preferred_element_type=jnp.float32)
    o_ref[...] = jnp.maximum(y3 + b3_ref[...] + x, 0.0).astype(o_ref.dtype)


def resblock_pallas(x_nchw, conv1_w, conv1_b, conv2_w, conv2_b, conv3_w, conv3_b):
    """Resblock forward. PyTorch conventions:
       x_nchw (B,C,H,W); conv1_w (Cmid,C,1,1); conv2_w (Cmid,Cmid,3,3) OIHW;
       conv3_w (C,Cmid,1,1); biases 1-D. Returns (B,C,H,W)."""
    B, C, H, W = x_nchw.shape
    Cmid = conv1_w.shape[0]
    HW = H * W
    BC, BM = B * C, B * Cmid
    f32 = jnp.float32

    # Layout assumptions behind the single (BC, HW) tile.
    assert HW % 128 == 0, "layout assumes H*W is a multiple of 128 (lane-dense)"
    assert BC <= 8, "layout assumes B*C fits on the 8 sublanes of one vreg row"

    # ---- layout plumbing / weight prep in plain JAX (outside the kernel) ----
    x_flat = x_nchw.reshape(BC, HW).astype(f32)                # (BC, HW)

    eye_b = jnp.eye(B, dtype=f32)
    w1_bd = jnp.kron(eye_b, conv1_w.reshape(Cmid, C).astype(f32))   # (BM, BC)
    b1_bd = jnp.tile(conv1_b.astype(f32), B).reshape(BM, 1)
    # OIHW -> (tap, out, in), then block-diagonal over batch per tap.
    w2_t = jnp.transpose(conv2_w.astype(f32), (2, 3, 0, 1)).reshape(9, Cmid, Cmid)
    w2_bd = jnp.stack([jnp.kron(eye_b, w2_t[t]) for t in range(9)], axis=0)  # (9,BM,BM)
    b2_bd = jnp.tile(conv2_b.astype(f32), B).reshape(BM, 1)
    w3_bd = jnp.kron(eye_b, conv3_w.reshape(C, Cmid).astype(f32))   # (BC, BM)
    b3_bd = jnp.tile(conv3_b.astype(f32), B).reshape(BC, 1)

    # Precompute the 9 zero-padding boundary masks of the 3x3 conv, one (HW,)
    # row per tap (shared across batch and channel -> broadcast on sublanes
    # in-kernel; no (9, Cmid, HW) blowup, single tiny DMA stream).
    hh = np.arange(H).reshape(H, 1)
    ww = np.arange(W).reshape(1, W)
    masks_np = np.ones((9, H, W), np.float32)
    for dh in range(3):
        for dw in range(3):
            m = np.ones((H, W), np.float32)
            if dh == 0:
                m = m * (hh >= 1)
            if dh == 2:
                m = m * (hh <= H - 2)
            if dw == 0:
                m = m * (ww >= 1)
            if dw == 2:
                m = m * (ww <= W - 2)
            masks_np[dh * 3 + dw] = m
    masks = jnp.asarray(masks_np.reshape(9, HW))

    kernel = functools.partial(_resblock_kernel, W=W, HW=HW)
    z2 = lambda i: (0, 0)
    z3 = lambda i: (0, 0, 0)

    out_flat = pl.pallas_call(
        kernel,
        out_shape=jax.ShapeDtypeStruct((BC, HW), x_nchw.dtype),
        grid_spec=pltpu.PrefetchScalarGridSpec(
            num_scalar_prefetch=0,
            grid=(1,),                                   # single step: batch folded
            in_specs=[
                pl.BlockSpec((BC, HW), z2),              # x (batch on sublanes)
                pl.BlockSpec((BM, BC), z2),              # conv1 weight (block-diag)
                pl.BlockSpec((BM, 1), z2),               # conv1 bias column
                pl.BlockSpec((9, BM, BM), z3),           # conv2 per-tap weights
                pl.BlockSpec((BM, 1), z2),               # conv2 bias column
                pl.BlockSpec((BC, BM), z2),              # conv3 weight (block-diag)
                pl.BlockSpec((BC, 1), z2),               # conv3 bias column
                pl.BlockSpec((9, HW), z2),               # 3x3 boundary masks
            ],
            out_specs=pl.BlockSpec((BC, HW), z2),
        ),
        compiler_params=pltpu.CompilerParams(
            dimension_semantics=("arbitrary",)),
    )(x_flat, w1_bd, b1_bd, w2_bd, b2_bd, w3_bd, b3_bd, masks)
    return out_flat.reshape(B, C, H, W)


def resblock_reference(x_nchw, conv1_w, conv1_b, conv2_w, conv2_b, conv3_w, conv3_b):
    """Pure-JAX reference (lax.conv, NCHW/OIHW like PyTorch)."""
    dn = ("NCHW", "OIHW", "NCHW")
    y = lax.conv_general_dilated(x_nchw, conv1_w, (1, 1), "SAME",
                                 dimension_numbers=dn) + conv1_b.reshape(1, -1, 1, 1)
    y = jax.nn.relu(y)
    y = lax.conv_general_dilated(y, conv2_w, (1, 1), "SAME",
                                 dimension_numbers=dn) + conv2_b.reshape(1, -1, 1, 1)
    y = jax.nn.relu(y)
    y = lax.conv_general_dilated(y, conv3_w, (1, 1), "SAME",
                                 dimension_numbers=dn) + conv3_b.reshape(1, -1, 1, 1)
    return jax.nn.relu(y + x_nchw)


if __name__ == "__main__":
    B, C, H, W = 2, 4, 16, 16
    Cmid = C // 2

    key = jax.random.PRNGKey(0)
    kx, k1, kb1, k2, kb2, k3, kb3 = jax.random.split(key, 7)

    # Deterministic synthetic parameters (PyTorch nn.Conv2d shapes, OIHW).
    x = jax.random.normal(kx, (B, C, H, W), dtype=jnp.float32)
    conv1_w = jax.random.normal(k1, (Cmid, C, 1, 1), dtype=jnp.float32) * 0.3
    conv1_b = jax.random.normal(kb1, (Cmid,), dtype=jnp.float32) * 0.1
    conv2_w = jax.random.normal(k2, (Cmid, Cmid, 3, 3), dtype=jnp.float32) * 0.3
    conv2_b = jax.random.normal(kb2, (Cmid,), dtype=jnp.float32) * 0.1
    conv3_w = jax.random.normal(k3, (C, Cmid, 1, 1), dtype=jnp.float32) * 0.3
    conv3_b = jax.random.normal(kb3, (C,), dtype=jnp.float32) * 0.1

    out = resblock_pallas(x, conv1_w, conv1_b, conv2_w, conv2_b,
                          conv3_w, conv3_b)
    out = jax.block_until_ready(out)

    ref = resblock_reference(x, conv1_w, conv1_b, conv2_w, conv2_b,
                             conv3_w, conv3_b)
    np.testing.assert_allclose(np.asarray(out), np.asarray(ref),
                               rtol=1e-5, atol=1e-5)

    print("KERNEL_OK")
</pallas_src>

<mosaic_0001>
module attributes {stable_mosaic.version = 11 : i64} {
  func.func @_resblock_kernel(%arg0: i32, %arg1: memref<8x256xf32, #tpu.memory_space<vmem>>, %arg2: memref<4x8xf32, #tpu.memory_space<vmem>>, %arg3: memref<4x1xf32, #tpu.memory_space<vmem>>, %arg4: memref<9x4x4xf32, #tpu.memory_space<vmem>>, %arg5: memref<4x1xf32, #tpu.memory_space<vmem>>, %arg6: memref<8x4xf32, #tpu.memory_space<vmem>>, %arg7: memref<8x1xf32, #tpu.memory_space<vmem>>, %arg8: memref<9x256xf32, #tpu.memory_space<vmem>>, %arg9: memref<8x256xf32, #tpu.memory_space<vmem>>) attributes {dimension_semantics = [#tpu.dimension_semantics<arbitrary>], iteration_bounds = array<i64: 1>, scalar_prefetch = 0 : i64, scratch_operands = 0 : i64, tpu.core_type = #tpu.core_type<tc>, window_params = [{pipeline_mode = #tpu.pipeline_mode<synchronous>, transform_indices = @transform_0, window_bounds = array<i64: 8, 256>}, {pipeline_mode = #tpu.pipeline_mode<synchronous>, transform_indices = @transform_1, window_bounds = array<i64: 4, 8>}, {pipeline_mode = #tpu.pipeline_mode<synchronous>, transform_indices = @transform_2, window_bounds = array<i64: 4, 1>}, {pipeline_mode = #tpu.pipeline_mode<synchronous>, transform_indices = @transform_3, window_bounds = array<i64: 9, 4, 4>}, {pipeline_mode = #tpu.pipeline_mode<synchronous>, transform_indices = @transform_4, window_bounds = array<i64: 4, 1>}, {pipeline_mode = #tpu.pipeline_mode<synchronous>, transform_indices = @transform_5, window_bounds = array<i64: 8, 4>}, {pipeline_mode = #tpu.pipeline_mode<synchronous>, transform_indices = @transform_6, window_bounds = array<i64: 8, 1>}, {pipeline_mode = #tpu.pipeline_mode<synchronous>, transform_indices = @transform_7, window_bounds = array<i64: 9, 256>}, {pipeline_mode = #tpu.pipeline_mode<synchronous>, transform_indices = @transform_8, window_bounds = array<i64: 8, 256>}]} {
    %c0 = arith.constant 0 : index
    %c0_0 = arith.constant 0 : index
    %0 = vector.load %arg1[%c0, %c0_0] : memref<8x256xf32, #tpu.memory_space<vmem>>, vector<8x256xf32>
    %c0_1 = arith.constant 0 : index
    %c0_2 = arith.constant 0 : index
    %1 = vector.load %arg2[%c0_1, %c0_2] : memref<4x8xf32, #tpu.memory_space<vmem>>, vector<4x8xf32>
    %cst = arith.constant dense<0.000000e+00> : vector<4x256xf32>
    %2 = tpu.matmul %1, %0, %cst {dimension_numbers = #tpu.dot_dimension_numbers<[1], [0], [0], [1], [0, 0, 1, 1], [], []>} : vector<4x8xf32>, vector<8x256xf32>, vector<4x256xf32> -> vector<4x256xf32>
    %c0_3 = arith.constant 0 : index
    %c0_4 = arith.constant 0 : index
    %3 = vector.load %arg3[%c0_3, %c0_4] : memref<4x1xf32, #tpu.memory_space<vmem>>, vector<4x1xf32>
    %4 = vector.broadcast %3 : vector<4x1xf32> to vector<4x256xf32>
    %5 = arith.addf %2, %4 : vector<4x256xf32>
    %cst_5 = arith.constant 0.000000e+00 : f32
    %6 = vector.broadcast %cst_5 : f32 to vector<4x256xf32>
    %7 = arith.maximumf %5, %6 : vector<4x256xf32>
    %c0_6 = arith.constant 0 : index
    %c0_7 = arith.constant 0 : index
    %8 = vector.load %arg8[%c0_6, %c0_7] : memref<9x256xf32, #tpu.memory_space<vmem>>, vector<1x256xf32>
    %c17_i32 = arith.constant 17 : i32
    %9 = tpu.dynamic_rotate %7 by %c17_i32 dim 1 : vector<4x256xf32>, i32 -> vector<4x256xf32>
    %10 = vector.broadcast %8 : vector<1x256xf32> to vector<4x256xf32>
    %11 = arith.mulf %9, %10 : vector<4x256xf32>
    %c0_8 = arith.constant 0 : index
    %c0_9 = arith.constant 0 : index
    %c0_10 = arith.constant 0 : index
    %12 = vector.load %arg4[%c0_8, %c0_9, %c0_10] : memref<9x4x4xf32, #tpu.memory_space<vmem>>, vector<1x4x4xf32>
    %13 = vector.shape_cast %12 : vector<1x4x4xf32> to vector<4x4xf32>
    %cst_11 = arith.constant dense<0.000000e+00> : vector<4x256xf32>
    %14 = tpu.matmul %13, %11, %cst_11 {dimension_numbers = #tpu.dot_dimension_numbers<[1], [0], [0], [1], [0, 0, 1, 1], [], []>} : vector<4x4xf32>, vector<4x256xf32>, vector<4x256xf32> -> vector<4x256xf32>
    %c1 = arith.constant 1 : index
    %c0_12 = arith.constant 0 : index
    %15 = vector.load %arg8[%c1, %c0_12] : memref<9x256xf32, #tpu.memory_space<vmem>>, vector<1x256xf32>
    %c16_i32 = arith.constant 16 : i32
    %16 = tpu.dynamic_rotate %7 by %c16_i32 dim 1 : vector<4x256xf32>, i32 -> vector<4x256xf32>
    %17 = vector.broadcast %15 : vector<1x256xf32> to vector<4x256xf32>
    %18 = arith.mulf %16, %17 : vector<4x256xf32>
    %c1_13 = arith.constant 1 : index
    %c0_14 = arith.constant 0 : index
    %c0_15 = arith.constant 0 : index
    %19 = vector.load %arg4[%c1_13, %c0_14, %c0_15] : memref<9x4x4xf32, #tpu.memory_space<vmem>>, vector<1x4x4xf32>
    %20 = vector.shape_cast %19 : vector<1x4x4xf32> to vector<4x4xf32>
    %cst_16 = arith.constant dense<0.000000e+00> : vector<4x256xf32>
    %21 = tpu.matmul %20, %18, %cst_16 {dimension_numbers = #tpu.dot_dimension_numbers<[1], [0], [0], [1], [0, 0, 1, 1], [], []>} : vector<4x4xf32>, vector<4x256xf32>, vector<4x256xf32> -> vector<4x256xf32>
    %22 = arith.addf %14, %21 : vector<4x256xf32>
    %c2 = arith.constant 2 : index
    %c0_17 = arith.constant 0 : index
    %23 = vector.load %arg8[%c2, %c0_17] : memref<9x256xf32, #tpu.memory_space<vmem>>, vector<1x256xf32>
    %c15_i32 = arith.constant 15 : i32
    %24 = tpu.dynamic_rotate %7 by %c15_i32 dim 1 : vector<4x256xf32>, i32 -> vector<4x256xf32>
    %25 = vector.broadcast %23 : vector<1x256xf32> to vector<4x256xf32>
    %26 = arith.mulf %24, %25 : vector<4x256xf32>
    %c2_18 = arith.constant 2 : index
    %c0_19 = arith.constant 0 : index
    %c0_20 = arith.constant 0 : index
    %27 = vector.load %arg4[%c2_18, %c0_19, %c0_20] : memref<9x4x4xf32, #tpu.memory_space<vmem>>, vector<1x4x4xf32>
    %28 = vector.shape_cast %27 : vector<1x4x4xf32> to vector<4x4xf32>
    %cst_21 = arith.constant dense<0.000000e+00> : vector<4x256xf32>
    %29 = tpu.matmul %28, %26, %cst_21 {dimension_numbers = #tpu.dot_dimension_numbers<[1], [0], [0], [1], [0, 0, 1, 1], [], []>} : vector<4x4xf32>, vector<4x256xf32>, vector<4x256xf32> -> vector<4x256xf32>
    %30 = arith.addf %22, %29 : vector<4x256xf32>
    %c3 = arith.constant 3 : index
    %c0_22 = arith.constant 0 : index
    %31 = vector.load %arg8[%c3, %c0_22] : memref<9x256xf32, #tpu.memory_space<vmem>>, vector<1x256xf32>
    %c1_i32 = arith.constant 1 : i32
    %32 = tpu.dynamic_rotate %7 by %c1_i32 dim 1 : vector<4x256xf32>, i32 -> vector<4x256xf32>
    %33 = vector.broadcast %31 : vector<1x256xf32> to vector<4x256xf32>
    %34 = arith.mulf %32, %33 : vector<4x256xf32>
    %c3_23 = arith.constant 3 : index
    %c0_24 = arith.constant 0 : index
    %c0_25 = arith.constant 0 : index
    %35 = vector.load %arg4[%c3_23, %c0_24, %c0_25] : memref<9x4x4xf32, #tpu.memory_space<vmem>>, vector<1x4x4xf32>
    %36 = vector.shape_cast %35 : vector<1x4x4xf32> to vector<4x4xf32>
    %cst_26 = arith.constant dense<0.000000e+00> : vector<4x256xf32>
    %37 = tpu.matmul %36, %34, %cst_26 {dimension_numbers = #tpu.dot_dimension_numbers<[1], [0], [0], [1], [0, 0, 1, 1], [], []>} : vector<4x4xf32>, vector<4x256xf32>, vector<4x256xf32> -> vector<4x256xf32>
    %38 = arith.addf %30, %37 : vector<4x256xf32>
    %c4 = arith.constant 4 : index
    %c0_27 = arith.constant 0 : index
    %c0_28 = arith.constant 0 : index
    %39 = vector.load %arg4[%c4, %c0_27, %c0_28] : memref<9x4x4xf32, #tpu.memory_space<vmem>>, vector<1x4x4xf32>
    %40 = vector.shape_cast %39 : vector<1x4x4xf32> to vector<4x4xf32>
    %cst_29 = arith.constant dense<0.000000e+00> : vector<4x256xf32>
    %41 = tpu.matmul %40, %7, %cst_29 {dimension_numbers = #tpu.dot_dimension_numbers<[1], [0], [0], [1], [0, 0, 1, 1], [], []>} : vector<4x4xf32>, vector<4x256xf32>, vector<4x256xf32> -> vector<4x256xf32>
    %42 = arith.addf %38, %41 : vector<4x256xf32>
    %c5 = arith.constant 5 : index
    %c0_30 = arith.constant 0 : index
    %43 = vector.load %arg8[%c5, %c0_30] : memref<9x256xf32, #tpu.memory_space<vmem>>, vector<1x256xf32>
    %c255_i32 = arith.constant 255 : i32
    %44 = tpu.dynamic_rotate %7 by %c255_i32 dim 1 : vector<4x256xf32>, i32 -> vector<4x256xf32>
    %45 = vector.broadcast %43 : vector<1x256xf32> to vector<4x256xf32>
    %46 = arith.mulf %44, %45 : vector<4x256xf32>
    %c5_31 = arith.constant 5 : index
    %c0_32 = arith.constant 0 : index
    %c0_33 = arith.constant 0 : index
    %47 = vector.load %arg4[%c5_31, %c0_32, %c0_33] : memref<9x4x4xf32, #tpu.memory_space<vmem>>, vector<1x4x4xf32>
    %48 = vector.shape_cast %47 : vector<1x4x4xf32> to vector<4x4xf32>
    %cst_34 = arith.constant dense<0.000000e+00> : vector<4x256xf32>
    %49 = tpu.matmul %48, %46, %cst_34 {dimension_numbers = #tpu.dot_dimension_numbers<[1], [0], [0], [1], [0, 0, 1, 1], [], []>} : vector<4x4xf32>, vector<4x256xf32>, vector<4x256xf32> -> vector<4x256xf32>
    %50 = arith.addf %42, %49 : vector<4x256xf32>
    %c6 = arith.constant 6 : index
    %c0_35 = arith.constant 0 : index
    %51 = vector.load %arg8[%c6, %c0_35] : memref<9x256xf32, #tpu.memory_space<vmem>>, vector<1x256xf32>
    %c241_i32 = arith.constant 241 : i32
    %52 = tpu.dynamic_rotate %7 by %c241_i32 dim 1 : vector<4x256xf32>, i32 -> vector<4x256xf32>
    %53 = vector.broadcast %51 : vector<1x256xf32> to vector<4x256xf32>
    %54 = arith.mulf %52, %53 : vector<4x256xf32>
    %c6_36 = arith.constant 6 : index
    %c0_37 = arith.constant 0 : index
    %c0_38 = arith.constant 0 : index
    %55 = vector.load %arg4[%c6_36, %c0_37, %c0_38] : memref<9x4x4xf32, #tpu.memory_space<vmem>>, vector<1x4x4xf32>
    %56 = vector.shape_cast %55 : vector<1x4x4xf32> to vector<4x4xf32>
    %cst_39 = arith.constant dense<0.000000e+00> : vector<4x256xf32>
    %57 = tpu.matmul %56, %54, %cst_39 {dimension_numbers = #tpu.dot_dimension_numbers<[1], [0], [0], [1], [0, 0, 1, 1], [], []>} : vector<4x4xf32>, vector<4x256xf32>, vector<4x256xf32> -> vector<4x256xf32>
    %58 = arith.addf %50, %57 : vector<4x256xf32>
    %c7 = arith.constant 7 : index
    %c0_40 = arith.constant 0 : index
    %59 = vector.load %arg8[%c7, %c0_40] : memref<9x256xf32, #tpu.memory_space<vmem>>, vector<1x256xf32>
    %c240_i32 = arith.constant 240 : i32
    %60 = tpu.dynamic_rotate %7 by %c240_i32 dim 1 : vector<4x256xf32>, i32 -> vector<4x256xf32>
    %61 = vector.broadcast %59 : vector<1x256xf32> to vector<4x256xf32>
    %62 = arith.mulf %60, %61 : vector<4x256xf32>
    %c7_41 = arith.constant 7 : index
    %c0_42 = arith.constant 0 : index
    %c0_43 = arith.constant 0 : index
    %63 = vector.load %arg4[%c7_41, %c0_42, %c0_43] : memref<9x4x4xf32, #tpu.memory_space<vmem>>, vector<1x4x4xf32>
    %64 = vector.shape_cast %63 : vector<1x4x4xf32> to vector<4x4xf32>
    %cst_44 = arith.constant dense<0.000000e+00> : vector<4x256xf32>
    %65 = tpu.matmul %64, %62, %cst_44 {dimension_numbers = #tpu.dot_dimension_numbers<[1], [0], [0], [1], [0, 0, 1, 1], [], []>} : vector<4x4xf32>, vector<4x256xf32>, vector<4x256xf32> -> vector<4x256xf32>
    %66 = arith.addf %58, %65 : vector<4x256xf32>
    %c8 = arith.constant 8 : index
    %c0_45 = arith.constant 0 : index
    %67 = vector.load %arg8[%c8, %c0_45] : memref<9x256xf32, #tpu.memory_space<vmem>>, vector<1x256xf32>
    %c239_i32 = arith.constant 239 : i32
    %68 = tpu.dynamic_rotate %7 by %c239_i32 dim 1 : vector<4x256xf32>, i32 -> vector<4x256xf32>
    %69 = vector.broadcast %67 : vector<1x256xf32> to vector<4x256xf32>
    %70 = arith.mulf %68, %69 : vector<4x256xf32>
    %c8_46 = arith.constant 8 : index
    %c0_47 = arith.constant 0 : index
    %c0_48 = arith.constant 0 : index
    %71 = vector.load %arg4[%c8_46, %c0_47, %c0_48] : memref<9x4x4xf32, #tpu.memory_space<vmem>>, vector<1x4x4xf32>
    %72 = vector.shape_cast %71 : vector<1x4x4xf32> to vector<4x4xf32>
    %cst_49 = arith.constant dense<0.000000e+00> : vector<4x256xf32>
    %73 = tpu.matmul %72, %70, %cst_49 {dimension_numbers = #tpu.dot_dimension_numbers<[1], [0], [0], [1], [0, 0, 1, 1], [], []>} : vector<4x4xf32>, vector<4x256xf32>, vector<4x256xf32> -> vector<4x256xf32>
    %74 = arith.addf %66, %73 : vector<4x256xf32>
    %c0_50 = arith.constant 0 : index
    %c0_51 = arith.constant 0 : index
    %75 = vector.load %arg5[%c0_50, %c0_51] : memref<4x1xf32, #tpu.memory_space<vmem>>, vector<4x1xf32>
    %76 = vector.broadcast %75 : vector<4x1xf32> to vector<4x256xf32>
    %77 = arith.addf %74, %76 : vector<4x256xf32>
    %cst_52 = arith.constant 0.000000e+00 : f32
    %78 = vector.broadcast %cst_52 : f32 to vector<4x256xf32>
    %79 = arith.maximumf %77, %78 : vector<4x256xf32>
    %c0_53 = arith.constant 0 : index
    %c0_54 = arith.constant 0 : index
    %80 = vector.load %arg6[%c0_53, %c0_54] : memref<8x4xf32, #tpu.memory_space<vmem>>, vector<8x4xf32>
    %cst_55 = arith.constant dense<0.000000e+00> : vector<8x256xf32>
    %81 = tpu.matmul %80, %79, %cst_55 {dimension_numbers = #tpu.dot_dimension_numbers<[1], [0], [0], [1], [0, 0, 1, 1], [], []>} : vector<8x4xf32>, vector<4x256xf32>, vector<8x256xf32> -> vector<8x256xf32>
    %c0_56 = arith.constant 0 : index
    %c0_57 = arith.constant 0 : index
    %82 = vector.load %arg7[%c0_56, %c0_57] : memref<8x1xf32, #tpu.memory_space<vmem>>, vector<8x1xf32>
    %83 = vector.broadcast %82 : vector<8x1xf32> to vector<8x256xf32>
    %84 = arith.addf %81, %83 : vector<8x256xf32>
    %85 = arith.addf %84, %0 : vector<8x256xf32>
    %cst_58 = arith.constant 0.000000e+00 : f32
    %86 = vector.broadcast %cst_58 : f32 to vector<8x256xf32>
    %87 = arith.maximumf %85, %86 : vector<8x256xf32>
    %c0_59 = arith.constant 0 : index
    %c0_60 = arith.constant 0 : index
    %88 = vector.load %arg9[%c0_59, %c0_60] : memref<8x256xf32, #tpu.memory_space<vmem>>, vector<8x256xf32>
    tpu.vector_store %arg9[%c0_59, %c0_60], %87 {strides = array<i32>} : memref<8x256xf32, #tpu.memory_space<vmem>>, vector<8x256xf32>,
    return
  }
  func.func @transform_0(%arg0: i32) -> (i32, i32) {
    %c0_i32 = arith.constant 0 : i32
    %c0_i32_0 = arith.constant 0 : i32
    %c0_i32_1 = arith.constant 0 : i32
    return %c0_i32, %c0_i32_0 : i32, i32
  }
  func.func @transform_1(%arg0: i32) -> (i32, i32) {
    %c0_i32 = arith.constant 0 : i32
    %c0_i32_0 = arith.constant 0 : i32
    %c0_i32_1 = arith.constant 0 : i32
    return %c0_i32, %c0_i32_0 : i32, i32
  }
  func.func @transform_2(%arg0: i32) -> (i32, i32) {
    %c0_i32 = arith.constant 0 : i32
    %c0_i32_0 = arith.constant 0 : i32
    %c0_i32_1 = arith.constant 0 : i32
    return %c0_i32, %c0_i32_0 : i32, i32
  }
  func.func @transform_3(%arg0: i32) -> (i32, i32, i32) {
    %c0_i32 = arith.constant 0 : i32
    %c0_i32_0 = arith.constant 0 : i32
    %c0_i32_1 = arith.constant 0 : i32
    %c0_i32_2 = arith.constant 0 : i32
    return %c0_i32, %c0_i32_0, %c0_i32_1 : i32, i32, i32
  }
  func.func @transform_4(%arg0: i32) -> (i32, i32) {
    %c0_i32 = arith.constant 0 : i32
    %c0_i32_0 = arith.constant 0 : i32
    %c0_i32_1 = arith.constant 0 : i32
    return %c0_i32, %c0_i32_0 : i32, i32
  }
  func.func @transform_5(%arg0: i32) -> (i32, i32) {
    %c0_i32 = arith.constant 0 : i32
    %c0_i32_0 = arith.constant 0 : i32
    %c0_i32_1 = arith.constant 0 : i32
    return %c0_i32, %c0_i32_0 : i32, i32
  }
  func.func @transform_6(%arg0: i32) -> (i32, i32) {
    %c0_i32 = arith.constant 0 : i32
    %c0_i32_0 = arith.constant 0 : i32
    %c0_i32_1 = arith.constant 0 : i32
    return %c0_i32, %c0_i32_0 : i32, i32
  }
  func.func @transform_7(%arg0: i32) -> (i32, i32) {
    %c0_i32 = arith.constant 0 : i32
    %c0_i32_0 = arith.constant 0 : i32
    %c0_i32_1 = arith.constant 0 : i32
    return %c0_i32, %c0_i32_0 : i32, i32
  }
  func.func @transform_8(%arg0: i32) -> (i32, i32) {
    %c0_i32 = arith.constant 0 : i32
    %c0_i32_0 = arith.constant 0 : i32
    %c0_i32_1 = arith.constant 0 : i32
    return %c0_i32, %c0_i32_0 : i32, i32
  }
}

</mosaic_0001>

<bundles_post_ra>
// kernel: tpu_custom_call.1
= control target key start
LH: loop header
LB: loop body
LE: loop exit
PB: predicated region body
PF: predicated region fallthrough
CT: control target
= control target key end

     0   :  { %vm39_vm0 = vcmask 64512   ;;  %s1081_s0 = inlined_call_operand.vmem [shape: f32[8,256], index: 0, kind: input, shape index: {}]   ;;  %s1082_s1 = inlined_call_operand.vmem [shape: f32[4,8], index: 1, kind: input, shape index: {}]   ;;  %s1083_s2 = inlined_call_operand.vmem [shape: f32[4,1], index: 2, kind: input, shape index: {}]   ;;  %s1084_s3 = inlined_call_operand.vmem [shape: f32[9,4,4], index: 3, kind: input, shape index: {}]   ;;  %s1085_s4 = inlined_call_operand.vmem [shape: f32[4,1], index: 4, kind: input, shape index: {}]   ;;  %s1086_s5 = inlined_call_operand.vmem [shape: f32[8,4], index: 5, kind: input, shape index: {}]   ;;  %s1087_s6 = inlined_call_operand.vmem [shape: f32[8,1], index: 6, kind: input, shape index: {}]   ;;  %s1088_s7 = inlined_call_operand.vmem [shape: f32[9,256], index: 7, kind: input, shape index: {}]   ;;  %s1089_s8 = inlined_call_operand.hbm [shape: f32[8,256], index: 8, kind: output, shape index: {}]  }
   0x1   :  { %v929_v0 = vld [vmem:[%s1081_s0] sm:$0xff]  ;;  %v934_v1 = vld [vmem:[%s1081_s0 + $0x8] sm:$0xff] }
   0x2   :  { %v32_v2 = vld [vmem:[%s1082_s1] sm:$0xf]  ;;  %58 = vmatpush.msra.mxu0 %v929_v0  ;;  %78 = vmatpush.msra.mxu1 %v934_v1 }
   0x3   :  { %v33_v3 = vld [vmem:[%s1083_s2] sm:$0xf] }
   0x4   :  { %13 = vsyncpa [#allocation3], 0  ;;  %776 = vmatmul.msk.f32.vlgmr.msra.gmra.mxu0 %vm39_vm0, %v32_v2  ;;  %777 = vmatmul.msk.f32.vlgmr.msra.gmra.mxu1 %vm39_vm0, %v32_v2  ;;  %v871_v4 = vmov 0   ;;  %s872_s0 = smov 15   ;;  %s873_s1 = smov 16   ;;  %v699_v12 = vld [vmem:[%s1087_s6] sm:$0xff]  ;;  %v90_v13 = vlaneseq }
   0x5   :  { %843 = vset.pattern.permute.xlu0 %v871_v4  ;;  %844 = vset.pattern.permute.xlu2 %v871_v4  ;;  %s874_s2 = smov 17   ;;  %s875_s13 = smov 1   ;;  %v778_v16 = vld [vmem:[%s1088_s7 + $0x1] ss:$8 sm:$0x3]  ;;  %vm125_vm2 = vcmask 1043456  }
   0x6   :  { %36 = vperm.xlu0 %843, %v33_v3   ;;  %s876_s14 = smov 113   ;;  %s877_s15 = smov 127   ;;  %v967_v15 = vand.u32 127, %v90_v13  ;;  %v113_v17 = vperm.slane %v778_v16, 0  ;;  %v114_v18 = vperm.slane %v778_v16, 1  ;;  %vm121_vm3 = vcmask 31744  }
   0x7   :  { %s878_s16 = smov 111   ;;  %s879_s17 = smov 112   ;;  %v779_v26 = vld [vmem:[%s1084_s3 + $0x4] sm:$0xf]  ;;  %v102_v43 = vld [vmem:[%s1084_s3] sm:$0xf] }
   0x8   :  { %vm109_vm1 = vcmp.lt.s32.totalorder %v967_v15, 16  ;;  %v788_v27 = vld [vmem:[%s1088_s7 + $0x2] ss:$8 sm:$0x3]  ;;  %vm227_vm4 = vcmp.lt.s32.totalorder %v967_v15, 15  ;;  %vm92_vm5 = vcmp.lt.s32.totalorder %v967_v15, 17 }
   0x9   :  { %v85_v28 = vld [vmem:[%s1088_s7] ss:$8 sm:$0x3]  ;;  %v231_v29 = vperm.slane %v788_v27, 0  ;;  %v232_v30 = vperm.slane %v788_v27, 1  ;;  %vm296_vm6 = vcmp.lt.s32.totalorder %v967_v15, 1 }
   0xa   :  { %v96_v31 = vperm.slane %v85_v28, 0  ;;  %v97_v32 = vperm.slane %v85_v28, 1  ;;  %v794_v44 = vld [vmem:[%s1088_s7 + $0x3] ss:$8 sm:$0x3]  ;;  %vm487_vm7 = vcmp.lt.s32.totalorder %v967_v15, 113 }
   0xb   :  { %v789_v46 = vld [vmem:[%s1084_s3 + $0x8] sm:$0xf]  ;;  %v300_v47 = vperm.slane %v794_v44, 0  ;;  %v301_v48 = vperm.slane %v794_v44, 1  ;;  %v688_v49 = vld [vmem:[%s1085_s4] sm:$0xf] }
   0xc   :  { %v795_v56 = vld [vmem:[%s1084_s3 + $0xc] sm:$0xf]  ;;  %v800_v58 = vld [vmem:[%s1084_s3 + $0x10] sm:$0xf]  ;;  %vm418_vm8 = vcmp.lt.s32.totalorder %v967_v15, 127  ;;  %vm625_vm9 = vcmp.lt.s32.totalorder %v967_v15, 111 }
   0xd   :  { %v811_v57 = vld [vmem:[%s1088_s7 + $0x6] ss:$8 sm:$0x3]  ;;  %v805_v59 = vld [vmem:[%s1088_s7 + $0x5] ss:$8 sm:$0x3] }
   0xe   :  { %v491_v61 = vperm.slane %v811_v57, 0  ;;  %v492_v62 = vperm.slane %v811_v57, 1  ;;  %v422_v63 = vperm.slane %v805_v59, 0  ;;  %v423_v2 = vperm.slane %v805_v59, 1  ;;  %v806_v13 = vld [vmem:[%s1084_s3 + $0x14] sm:$0xf] }
   0xf   :  { %v812_v16 = vld [vmem:[%s1084_s3 + $0x18] sm:$0xf]  ;;  %vm556_vm10 = vcmp.lt.s32.totalorder %v967_v15, 112  ;;  %s880_s28 = smov [#allocation2]   ;;  %s767_s9 = sshll.u32 %s1089_s8, 4  ;;  %s768_s9 = int_to_ptr.hbm [resolvable:$true] %s767_s9 }
  0x10   :  { %s765_s29 = sshll.u32 %s880_s28, 4  ;;  %s766_s29 = int_to_ptr.vmem [resolvable:$true] %s765_s29 }
  0x78   :  { %v37_v5 = vpop.permute.xlu0 %36 }
  0x81   :  { %v60_v6 = vpop.f32.mrf.mxu0  ;;  %v80_v7 = vpop.f32.mrf.mxu1 }
  0x82   :  { %v61_v8 = vadd.f32 %v60_v6, %v37_v5  ;;  %v81_v9 = vadd.f32 %v80_v7, %v37_v5 }
  0x84   :  { %v944_v10 = vmax.f32 %v61_v8, 0.0  ;;  %v946_v11 = vmax.f32 %v81_v9, 0.0 }
  0x86   :  { %225 = vrot.lane.b32.xlu2 %v946_v11, %s872_s0  ;;  %107 = vrot.lane.b32.xlu1 %v946_v11, %s873_s1 }
  0x87   :  { %105 = vrot.lane.b32.xlu0 %v944_v10, %s873_s1 }
  0x8e   :  { %86 = vrot.lane.b32.xlu2 %v944_v10, %s874_s2  ;;  %223 = vrot.lane.b32.xlu1 %v944_v10, %s872_s0 }
  0x8f   :  { %88 = vrot.lane.b32.xlu0 %v946_v11, %s874_s2 }
  0x96   :  { %294 = vrot.lane.b32.xlu2 %v946_v11, %s875_s13  ;;  %292 = vrot.lane.b32.xlu1 %v944_v10, %s875_s13 }
  0x97   :  { %483 = vrot.lane.b32.xlu0 %v944_v10, %s876_s14 }
  0x9e   :  { %414 = vrot.lane.b32.xlu2 %v944_v10, %s877_s15  ;;  %485 = vrot.lane.b32.xlu1 %v946_v11, %s876_s14 }
  0x9f   :  { %416 = vrot.lane.b32.xlu0 %v946_v11, %s877_s15 }
  0xa6   :  { %623 = vrot.lane.b32.xlu2 %v946_v11, %s878_s16  ;;  %621 = vrot.lane.b32.xlu1 %v944_v10, %s878_s16 }
  0xa7   :  { %552 = vrot.lane.b32.xlu0 %v944_v10, %s879_s17 }
  0xae   :  { %554 = vrot.lane.b32.xlu1 %v946_v11, %s879_s17  ;;  %691 = vperm.xlu2 %844, %v688_v49  }
  0xaf   :  { %702 = vperm.xlu0 %843, %v699_v12  }
  0xe0   :  { %v226_v14 = vpop.permute.xlu2 %225 }
  0xe8   :  { %v87_v21 = vpop.permute.xlu2 %86 }
  0xf0   :  { %v295_v45 = vpop.permute.xlu2 %294 }
  0xf8   :  { %v108_v19 = vpop.permute.xlu1 %107  ;;  %v415_v60 = vpop.permute.xlu2 %414 }
  0xf9   :  { %v106_v20 = vpop.permute.xlu0 %105 }
  0xfa   :  { %v110_v22 = vsel %vm109_vm1, %v106_v20, %v108_v19  ;;  %v111_v23 = vsel %vm109_vm1, %v108_v19, %v106_v20 }
  0xfb   :  { %v117_v24 = vmul.f32 %v113_v17, %v111_v23  ;;  %v118_v25 = vmul.f32 %v114_v18, %v110_v22 }
  0xfd   :  { %780 = vmatpush.msk.msra.mxu2 %vm125_vm2, %v117_v24  ;;  %782 = vmatpush.msk.msra.mxu3 %vm125_vm2, %v118_v25  ;;  %v817_v25 = vld [vmem:[%s1088_s7 + $0x7] ss:$8 sm:$0x3] }
  0xfe   :  { %781 = vmatmul.msk.f32.vlgmr.msra.gmra.mxu2 %vm121_vm3, %v779_v26  ;;  %783 = vmatmul.msk.f32.vlgmr.msra.gmra.mxu3 %vm121_vm3, %v779_v26  ;;  %v824_v26 = vld [vmem:[%s1084_s3 + $0x20] sm:$0xf]  ;;  %v560_v27 = vperm.slane %v817_v25, 0  ;;  %v561_v28 = vperm.slane %v817_v25, 1 }
 0x100   :  { %v224_v33 = vpop.permute.xlu1 %223  ;;  %v624_v19 = vpop.permute.xlu2 %623 }
 0x101   :  { %v228_v34 = vsel %vm227_vm4, %v224_v33, %v226_v14  ;;  %v229_v35 = vsel %vm227_vm4, %v226_v14, %v224_v33  ;;  %v89_v36 = vpop.permute.xlu0 %88  ;;  %v823_v14 = vld [vmem:[%s1088_s7 + $0x10] ss:$8 sm:$0x3] }
 0x102   :  { %v235_v37 = vmul.f32 %v231_v29, %v229_v35  ;;  %v236_v38 = vmul.f32 %v232_v30, %v228_v34  ;;  %v93_v39 = vsel %vm92_vm5, %v87_v21, %v89_v36  ;;  %v94_v40 = vsel %vm92_vm5, %v89_v36, %v87_v21  ;;  %v818_v35 = vld [vmem:[%s1084_s3 + $0x1c] sm:$0xf] }
 0x103   :  { %v100_v41 = vmul.f32 %v96_v31, %v94_v40  ;;  %v101_v42 = vmul.f32 %v97_v32, %v93_v39  ;;  %v629_v17 = vperm.slane %v823_v14, 0  ;;  %v630_v18 = vperm.slane %v823_v14, 1 }
 0x104   :  { %790 = vmatpush.msk.msrb.mxu2 %vm125_vm2, %v235_v37  ;;  %792 = vmatpush.msk.msrb.mxu3 %vm125_vm2, %v236_v38 }
 0x105   :  { %784 = vmatpush.msk.msrb.mxu0 %vm125_vm2, %v100_v41  ;;  %786 = vmatpush.msk.msrb.mxu1 %vm125_vm2, %v101_v42 }
 0x106   :  { %785 = vmatmul.msk.f32.vlgmr.msrb.gmra.mxu0 %vm121_vm3, %v102_v43  ;;  %787 = vmatmul.msk.f32.vlgmr.msrb.gmra.mxu1 %vm121_vm3, %v102_v43 }
 0x107   :  { %791 = vmatmul.msk.f32.vlgmr.msrb.gmra.mxu2 %vm121_vm3, %v789_v46  ;;  %793 = vmatmul.msk.f32.vlgmr.msrb.gmra.mxu3 %vm121_vm3, %v789_v46 }
 0x108   :  { %801 = vmatpush.msk.msra.mxu2 %vm125_vm2, %v944_v10  ;;  %803 = vmatpush.msk.msra.mxu3 %vm125_vm2, %v946_v11  ;;  %v293_v50 = vpop.permute.xlu1 %292 }
 0x109   :  { %v297_v51 = vsel %vm296_vm6, %v293_v50, %v295_v45  ;;  %v298_v52 = vsel %vm296_vm6, %v295_v45, %v293_v50  ;;  %v484_v53 = vpop.permute.xlu0 %483 }
 0x10a   :  { %v304_v54 = vmul.f32 %v300_v47, %v298_v52  ;;  %v305_v55 = vmul.f32 %v301_v48, %v297_v51 }
 0x10c   :  { %796 = vmatpush.msk.msra.mxu0 %vm125_vm2, %v304_v54  ;;  %798 = vmatpush.msk.msra.mxu1 %vm125_vm2, %v305_v55 }
 0x10e   :  { %797 = vmatmul.msk.f32.vlgmr.msra.gmra.mxu0 %vm121_vm3, %v795_v56  ;;  %799 = vmatmul.msk.f32.vlgmr.msra.gmra.mxu1 %vm121_vm3, %v795_v56 }
 0x10f   :  { %802 = vmatmul.msk.f32.vlgmr.msra.gmra.mxu2 %vm121_vm3, %v800_v58  ;;  %804 = vmatmul.msk.f32.vlgmr.msra.gmra.mxu3 %vm121_vm3, %v800_v58 }
 0x110   :  { %v486_v3 = vpop.permute.xlu1 %485 }
 0x111   :  { %v488_v4 = vsel %vm487_vm7, %v484_v53, %v486_v3  ;;  %v489_v5 = vsel %vm487_vm7, %v486_v3, %v484_v53  ;;  %v417_v6 = vpop.permute.xlu0 %416 }
 0x112   :  { %v495_v7 = vmul.f32 %v491_v61, %v488_v4  ;;  %v496_v8 = vmul.f32 %v492_v62, %v489_v5  ;;  %v419_v9 = vsel %vm418_vm8, %v415_v60, %v417_v6  ;;  %v420_v10 = vsel %vm418_vm8, %v417_v6, %v415_v60  ;;  %v692_v5 = vpop.permute.xlu2 %691 }
 0x113   :  { %v426_v11 = vmul.f32 %v422_v63, %v419_v9  ;;  %v427_v12 = vmul.f32 %v423_v2, %v420_v10 }
 0x114   :  { %813 = vmatpush.msk.msrb.mxu2 %vm125_vm2, %v495_v7  ;;  %815 = vmatpush.msk.msrb.mxu3 %vm125_vm2, %v496_v8 }
 0x115   :  { %807 = vmatpush.msk.msrb.mxu0 %vm125_vm2, %v426_v11  ;;  %809 = vmatpush.msk.msrb.mxu1 %vm125_vm2, %v427_v12  ;;  %v698_v12 = vld [vmem:[%s1086_s5] sm:$0xff] }
 0x116   :  { %808 = vmatmul.msk.f32.vlgmr.msrb.gmra.mxu0 %vm121_vm3, %v806_v13  ;;  %810 = vmatmul.msk.f32.vlgmr.msrb.gmra.mxu1 %vm121_vm3, %v806_v13 }
 0x117   :  { %814 = vmatmul.msk.f32.vlgmr.msrb.gmra.mxu2 %vm121_vm3, %v812_v16  ;;  %816 = vmatmul.msk.f32.vlgmr.msrb.gmra.mxu3 %vm121_vm3, %v812_v16 }
 0x118   :  { %v622_v20 = vpop.permute.xlu1 %621 }
 0x119   :  { %v626_v21 = vsel %vm625_vm9, %v622_v20, %v624_v19  ;;  %v627_v22 = vsel %vm625_vm9, %v624_v19, %v622_v20  ;;  %v553_v29 = vpop.permute.xlu0 %552 }
 0x11a   :  { %v633_v23 = vmul.f32 %v629_v17, %v626_v21  ;;  %v634_v24 = vmul.f32 %v630_v18, %v627_v22 }
 0x11c   :  { %825 = vmatpush.msk.msra.mxu2 %vm125_vm2, %v633_v23  ;;  %827 = vmatpush.msk.msra.mxu3 %vm125_vm2, %v634_v24 }
 0x11f   :  { %826 = vmatmul.msk.f32.vlgmr.msra.gmra.mxu2 %vm121_vm3, %v824_v26  ;;  %828 = vmatmul.msk.f32.vlgmr.msra.gmra.mxu3 %vm121_vm3, %v824_v26 }
 0x120   :  { %v555_v30 = vpop.permute.xlu1 %554 }
 0x121   :  { %v557_v31 = vsel %vm556_vm10, %v553_v29, %v555_v30  ;;  %v558_v32 = vsel %vm556_vm10, %v555_v30, %v553_v29  ;;  %v703_v13 = vpop.permute.xlu0 %702 }
 0x122   :  { %v564_v33 = vmul.f32 %v560_v27, %v557_v31  ;;  %v565_v34 = vmul.f32 %v561_v28, %v558_v32 }
 0x124   :  { %819 = vmatpush.msk.msra.mxu0 %vm125_vm2, %v564_v33  ;;  %821 = vmatpush.msk.msra.mxu1 %vm125_vm2, %v565_v34 }
 0x125   :  { %820 = vmatmul.msk.f32.vlgmr.msra.gmra.mxu0 %vm121_vm3, %v818_v35  ;;  %822 = vmatmul.msk.f32.vlgmr.msra.gmra.mxu1 %vm121_vm3, %v818_v35 }
 0x181   :  { %v149_v15 = vpop.f32.mrf.mxu2  ;;  %v169_v36 = vpop.f32.mrf.mxu3 }
 0x183   :  { %v198_v37 = vpop.f32.mrf.mxu0  ;;  %v218_v38 = vpop.f32.mrf.mxu1 }
 0x184   :  { %v199_v45 = vadd.f32 %v198_v37, %v149_v15  ;;  %v219_v46 = vadd.f32 %v218_v38, %v169_v36 }
 0x18a   :  { %v265_v39 = vpop.f32.mrf.mxu2  ;;  %v285_v40 = vpop.f32.mrf.mxu3 }
 0x18b   :  { %v334_v41 = vpop.f32.mrf.mxu0  ;;  %v354_v42 = vpop.f32.mrf.mxu1  ;;  %v288_v47 = vadd.f32 %v265_v39, %v199_v45  ;;  %v289_v48 = vadd.f32 %v285_v40, %v219_v46 }
 0x18d   :  { %v357_v49 = vadd.f32 %v334_v41, %v288_v47  ;;  %v358_v50 = vadd.f32 %v354_v42, %v289_v48 }
 0x192   :  { %v387_v43 = vpop.f32.mrf.mxu2  ;;  %v407_v44 = vpop.f32.mrf.mxu3 }
 0x193   :  { %v456_v51 = vpop.f32.mrf.mxu0  ;;  %v476_v52 = vpop.f32.mrf.mxu1  ;;  %v410_v53 = vadd.f32 %v387_v43, %v357_v49  ;;  %v411_v54 = vadd.f32 %v407_v44, %v358_v50 }
 0x195   :  { %v479_v57 = vadd.f32 %v456_v51, %v410_v53  ;;  %v480_v58 = vadd.f32 %v476_v52, %v411_v54 }
 0x19a   :  { %v525_v55 = vpop.f32.mrf.mxu2  ;;  %v545_v56 = vpop.f32.mrf.mxu3 }
 0x19b   :  { %v548_v59 = vadd.f32 %v525_v55, %v479_v57  ;;  %v549_v60 = vadd.f32 %v545_v56, %v480_v58 }
 0x1a2   :  { %v594_v61 = vpop.f32.mrf.mxu0  ;;  %v614_v62 = vpop.f32.mrf.mxu1 }
 0x1a3   :  { %v617_v63 = vadd.f32 %v594_v61, %v548_v59  ;;  %v618_v2 = vadd.f32 %v614_v62, %v549_v60  ;;  %v663_v3 = vpop.f32.mrf.mxu2  ;;  %v683_v4 = vpop.f32.mrf.mxu3 }
 0x1a5   :  { %v686_v6 = vadd.f32 %v663_v3, %v617_v63  ;;  %v687_v7 = vadd.f32 %v683_v4, %v618_v2 }
 0x1a7   :  { %v694_v8 = vadd.f32 %v692_v5, %v686_v6  ;;  %v695_v9 = vadd.f32 %v692_v5, %v687_v7 }
 0x1a9   :  { %v696_v10 = vmax.f32 %v694_v8, 0.0  ;;  %v697_v11 = vmax.f32 %v695_v9, 0.0 }
 0x1ab   :  { %829 = vmatpush.msk.msrb.mxu0 %vm125_vm2, %v696_v10  ;;  %831 = vmatpush.msk.msrb.mxu1 %vm125_vm2, %v697_v11 }
 0x1ac   :  { %830 = vmatmul.msk.f32.vlgmr.msrb.gmra.mxu0 %vm121_vm3, %v698_v12  ;;  %832 = vmatmul.msk.f32.vlgmr.msrb.gmra.mxu1 %vm121_vm3, %v698_v12 }
 0x229   :  { %v731_v14 = vpop.f32.mrf.mxu0  ;;  %v751_v16 = vpop.f32.mrf.mxu1 }
 0x22a   :  { %v732_v17 = vadd.f32 %v731_v14, %v703_v13  ;;  %v752_v18 = vadd.f32 %v751_v16, %v703_v13 }
 0x22c   :  { %v754_v19 = vadd.f32 %v732_v17, %v929_v0  ;;  %v755_v20 = vadd.f32 %v752_v18, %v934_v1 }
 0x22e   :  { %v756_v21 = vmax.f32 %v754_v19, 0.0  ;;  %v757_v22 = vmax.f32 %v755_v20, 0.0 }
 0x230   :  { %758 = vst [vmem:[#allocation2] sm:$0xff] %v756_v21 }
 0x231   :  { %759 = vst [vmem:[#allocation2 + $0x8] sm:$0xff] %v757_v22 }
 0x232   :  { %770 = dma.vmem_to_hbm [thread:$0]  %s766_s29, 256, %s768_s9, [#allocation3]  }
 0x233   :  { %869 = dma.done.wait [#allocation3], 256  }
 0x234   :  { %870 = vsyncadd [#allocation3], 4294967040 }
 0x235   :  { %775 = vsyncpa [#allocation3], 1 }

</bundles_post_ra>
